<compile_context>
chip_gen: v5e
topology: v5e:2x2
jax: 0.10.0
libtpu: 0.0.40
codegen_flags: <defaults>
</compile_context>

<pallas_src>
import functools

import jax
import jax.numpy as jnp
from jax.experimental import pallas as pl
from jax.experimental.pallas import tpu as pltpu

EXPANSION = 4
PLANES = (64, 128, 256, 512)
BLOCKS = (1, 1, 1, 1)  # ResNet-50 would be (3, 4, 6, 3); reduced for the demo
BN_EPS = 1e-5
VMEM_LIMIT = 32 * 1024 * 1024  # safe on v5e/v6e/v7x scoped-VMEM budgets


# ----------------------------------------------------------------------------
# Small helpers
# ----------------------------------------------------------------------------
def _round_up(x, m):
    return ((x + m - 1) // m) * m


def _pick_tile(dim, candidates):
    for c in candidates:
        if dim % c == 0:
            return c
    return dim


# ----------------------------------------------------------------------------
# Pallas kernels
# ----------------------------------------------------------------------------
def _mm_kernel(x_ref, w_ref, b_ref, o_ref, acc_ref, *, relu):
    k = pl.program_id(3)

    @pl.when(k == 0)
    def _():
        acc_ref[...] = jnp.zeros_like(acc_ref)

    acc_ref[...] += jnp.dot(x_ref[0], w_ref[0],
                            preferred_element_type=jnp.float32)

    @pl.when(k == pl.num_programs(3) - 1)
    def _():
        out = acc_ref[...] + b_ref[0]
        if relu:
            out = jnp.maximum(out, 0.0)
        o_ref[0] = out.astype(o_ref.dtype)


def _mm_res_kernel(x_ref, w_ref, b_ref, r_ref, o_ref, acc_ref, *, relu):
    k = pl.program_id(3)

    @pl.when(k == 0)
    def _():
        acc_ref[...] = jnp.zeros_like(acc_ref)

    acc_ref[...] += jnp.dot(x_ref[0], w_ref[0],
                            preferred_element_type=jnp.float32)

    @pl.when(k == pl.num_programs(3) - 1)
    def _():
        out = acc_ref[...] + b_ref[0] + r_ref[0].astype(jnp.float32)
        if relu:
            out = jnp.maximum(out, 0.0)
        o_ref[0] = out.astype(o_ref.dtype)


def _maxpool_kernel(x_ref, o_ref, *, kk):
    acc = x_ref[0]
    for t in range(1, kk):
        acc = jnp.maximum(acc, x_ref[t])
    o_ref[...] = acc


def _fuse_kernel(a_ref, o_ref):
    # TODO(synk): FFM definition (cross-attention feature fusion) is not in the
    # provided source; element-wise sum fusion stands in for it here.
    o_ref[...] = (a_ref[0].astype(jnp.float32)
                  + a_ref[1].astype(jnp.float32)).astype(o_ref.dtype)


# ----------------------------------------------------------------------------
# Pallas-call wrappers
# ----------------------------------------------------------------------------
def dual_matmul_bias_act(x, w, b, residual=None, relu=True,
                         out_dtype=jnp.bfloat16):
    """Batched (branch) matmul with fused BN-bias (+residual, +ReLU) epilogue.

    x: (G, M, K) bf16, w: (G, K, N) bf16, b: (G, 1, N) f32,
    residual: (G, M, N) bf16 or None.  M % 8 == 0, K % 128 == 0, N % 128 == 0.
    """
    G, M, K = x.shape
    _, _, N = w.shape

    tm = _pick_tile(M, (256, 128, 64, 32, 16, 8))
    tn = _pick_tile(N, (512, 256, 128))
    tk = _pick_tile(K, (512, 384, 256, 128))
    grid = (G, M // tm, N // tn, K // tk)

    x_spec = pl.BlockSpec((1, tm, tk), lambda g, i, j, k: (g, i, k))
    w_spec = pl.BlockSpec((1, tk, tn), lambda g, i, j, k: (g, k, j))
    b_spec = pl.BlockSpec((1, 1, tn), lambda g, i, j, k: (g, 0, j))
    o_spec = pl.BlockSpec((1, tm, tn), lambda g, i, j, k: (g, i, j))

    if residual is None:
        kernel = functools.partial(_mm_kernel, relu=relu)
        in_specs = [x_spec, w_spec, b_spec]
        args = (x, w, b)
        res_bytes = 0
    else:
        kernel = functools.partial(_mm_res_kernel, relu=relu)
        r_spec = pl.BlockSpec((1, tm, tn), lambda g, i, j, k: (g, i, j))
        in_specs = [x_spec, w_spec, b_spec, r_spec]
        args = (x, w, b, residual)
        res_bytes = residual.size * residual.dtype.itemsize

    cost = pl.CostEstimate(
        flops=2 * G * M * N * K,
        transcendentals=0,
        bytes_accessed=(x.size * x.dtype.itemsize
                        + w.size * w.dtype.itemsize
                        + b.size * b.dtype.itemsize
                        + G * M * N * jnp.dtype(out_dtype).itemsize
                        + res_bytes),
    )

    return pl.pallas_call(
        kernel,
        grid=grid,
        in_specs=in_specs,
        out_specs=o_spec,
        out_shape=jax.ShapeDtypeStruct((G, M, N), out_dtype),
        scratch_shapes=[pltpu.VMEM((tm, tn), jnp.float32)],
        compiler_params=pltpu.CompilerParams(
            dimension_semantics=("parallel", "parallel", "parallel",
                                 "arbitrary"),
            vmem_limit_bytes=VMEM_LIMIT),
        cost_estimate=cost,
    )(*args)


def maxpool_3x3_s2(x):
    """3x3 / stride-2 / pad-1 max pool on NHWC (bf16, C multiple of 128).

    Window extraction is glue; the 9-tap reduction runs in a tiled Pallas kernel.
    """
    # TODO(synk): the 9 taps are still materialized in HBM; an in-kernel strided
    # window reduction would cut this traffic further (stem-only, so small).
    n, h, w, c = x.shape
    k, s, pad = 3, 2, 1
    ho = (h + 2 * pad - k) // s + 1
    wo = (w + 2 * pad - k) // s + 1
    xp = jnp.pad(x, ((0, 0), (pad, pad), (pad, pad), (0, 0)),
                 constant_values=-jnp.inf)
    wins = [xp[:, i:i + s * (ho - 1) + 1:s, j:j + s * (wo - 1) + 1:s, :]
            for i in range(k) for j in range(k)]
    m = n * ho * wo
    stacked = jnp.stack(wins, axis=0).reshape(k * k, m, c)

    m_pad = _round_up(m, 8)
    if m_pad != m:
        stacked = jnp.pad(stacked, ((0, 0), (0, m_pad - m), (0, 0)))
    tm = _pick_tile(m_pad, (512, 256, 128, 64, 32, 16, 8))

    out = pl.pallas_call(
        functools.partial(_maxpool_kernel, kk=k * k),
        grid=(m_pad // tm,),
        in_specs=[pl.BlockSpec((k * k, tm, c), lambda i: (0, i, 0))],
        out_specs=pl.BlockSpec((tm, c), lambda i: (i, 0)),
        out_shape=jax.ShapeDtypeStruct((m_pad, c), x.dtype),
        compiler_params=pltpu.CompilerParams(
            dimension_semantics=("parallel",),
            vmem_limit_bytes=VMEM_LIMIT),
    )(stacked)
    return out[:m].reshape(n, ho, wo, c)


def ffm_fuse(x):
    """x: (2, B, H, W, C) bf16 (RGB branch, D branch) -> (B, H, W, C) f32."""
    g, n, h, w, c = x.shape
    m = n * h * w
    a = x.reshape(g, m, c)
    m_pad = _round_up(m, 8)
    if m_pad != m:
        a = jnp.pad(a, ((0, 0), (0, m_pad - m), (0, 0)))
    tm = _pick_tile(m_pad, (512, 256, 128, 64, 32, 16, 8))

    out = pl.pallas_call(
        _fuse_kernel,
        grid=(m_pad // tm,),
        in_specs=[pl.BlockSpec((g, tm, c), lambda i: (0, i, 0))],
        out_specs=pl.BlockSpec((tm, c), lambda i: (i, 0)),
        out_shape=jax.ShapeDtypeStruct((m_pad, c), jnp.float32),
        compiler_params=pltpu.CompilerParams(
            dimension_semantics=("parallel",),
            vmem_limit_bytes=VMEM_LIMIT),
    )(a)
    return out[:m].reshape(n, h, w, c)


# ----------------------------------------------------------------------------
# Conv / bottleneck building blocks (glue: im2col + prepared folded weights)
# ----------------------------------------------------------------------------
def _im2col_dual(x, kh, kw, stride, pad):
    """x: (2, B, H, W, C) -> patches (2, B*ho*wo, kh*kw*C)."""
    # TODO(synk): im2col still materializes kh*kw-x the activation volume for 3x3
    # convs; a tap-as-grid-reduction formulation would avoid that HBM round trip.
    g, n, h, w, c = x.shape
    ho = (h + 2 * pad - kh) // stride + 1
    wo = (w + 2 * pad - kw) // stride + 1
    xr = x.reshape(g * n, h, w, c)
    xp = jnp.pad(xr, ((0, 0), (pad, pad), (pad, pad), (0, 0)))
    cols = [xp[:, i:i + stride * (ho - 1) + 1:stride,
               j:j + stride * (wo - 1) + 1:stride, :]
            for i in range(kh) for j in range(kw)]
    patches = jnp.concatenate(cols, axis=-1)           # (g*n, ho, wo, kh*kw*c)
    return patches.reshape(g, n * ho * wo, kh * kw * c), (n, ho, wo)


def dual_conv_bn(x, cp, residual=None, relu=True):
    """Conv (both branches at once) with pre-folded BN, fused residual/ReLU."""
    patches, (n, ho, wo) = _im2col_dual(x, cp['kh'], cp['kw'],
                                        cp['stride'], cp['pad'])
    g, m, k = patches.shape
    k_pad = cp['w'].shape[1]
    n_pad = cp['w'].shape[2]
    m_pad = _round_up(m, 8)
    if k_pad != k or m_pad != m:
        patches = jnp.pad(patches, ((0, 0), (0, m_pad - m), (0, k_pad - k)))

    r = None
    if residual is not None:
        r = residual.reshape(g, -1, residual.shape[-1])
        if m_pad != m:
            r = jnp.pad(r, ((0, 0), (0, m_pad - m), (0, 0)))

    y = dual_matmul_bias_act(patches.astype(jnp.bfloat16), cp['w'], cp['b'],
                             residual=r, relu=relu)
    y = y[:, :m, :]
    return y.reshape(g, n, ho, wo, n_pad)


def dual_bottleneck(x, blk):
    identity = x
    out = dual_conv_bn(x, blk['conv1'], relu=True)
    out = dual_conv_bn(out, blk['conv2'], relu=True)
    if 'ds' in blk:
        identity = dual_conv_bn(x, blk['ds'], relu=False)
    # final 1x1 conv with fused residual add + ReLU in the matmul epilogue
    out = dual_conv_bn(out, blk['conv3'], relu=True, residual=identity)
    return out


# ----------------------------------------------------------------------------
# Parameter initialization (deterministic, synthetic) + one-time preparation
# ----------------------------------------------------------------------------
def _init_conv(key, cin, cout, k):
    fan_in = cin * k * k
    return (jax.random.normal(key, (cout, cin, k, k), jnp.float32)
            * (2.0 / fan_in) ** 0.5)


def _init_bn(key, c):
    k1, k2, k3, k4 = jax.random.split(key, 4)
    return dict(
        gamma=jax.random.uniform(k1, (c,), jnp.float32, 0.8, 1.2),
        beta=jax.random.normal(k2, (c,), jnp.float32) * 0.05,
        mean=jax.random.normal(k3, (c,), jnp.float32) * 0.05,
        var=jax.random.uniform(k4, (c,), jnp.float32, 0.8, 1.2),
    )


def init_backbone(key):
    keys = iter(jax.random.split(key, 512))
    p = {'conv1': _init_conv(next(keys), 3, 64, 7),
         'bn1': _init_bn(next(keys), 64)}
    in_c = 64
    layers = []
    for li, (planes, nblocks) in enumerate(zip(PLANES, BLOCKS)):
        stage_stride = 1 if li == 0 else 2
        blocks = []
        for bi in range(nblocks):
            s = stage_stride if bi == 0 else 1
            out_c = planes * EXPANSION
            blk = {
                'conv1': _init_conv(next(keys), in_c, planes, 1),
                'bn1': _init_bn(next(keys), planes),
                'conv2': _init_conv(next(keys), planes, planes, 3),
                'bn2': _init_bn(next(keys), planes),
                'conv3': _init_conv(next(keys), planes, out_c, 1),
                'bn3': _init_bn(next(keys), out_c),
                'stride': s,
            }
            if s != 1 or in_c != out_c:
                blk['ds_conv'] = _init_conv(next(keys), in_c, out_c, 1)
                blk['ds_bn'] = _init_bn(next(keys), out_c)
            blocks.append(blk)
            in_c = out_c
        layers.append(blocks)
    p['layers'] = layers
    return p


def init_dual_resnet(key):
    k1, k2 = jax.random.split(key)
    return {'backbone': init_backbone(k1), 'backbone_d': init_backbone(k2)}


def _fold_conv_bn(w_pair, bn_pair, cin_flow):
    """Fold BN into conv weights, pad to lane/K alignment, cast to bf16."""
    g, o, i, kh, kw = w_pair.shape
    scale = bn_pair['gamma'] / jnp.sqrt(bn_pair['var'] + BN_EPS)      # (2, O)
    bias = bn_pair['beta'] - bn_pair['mean'] * scale                  # (2, O)
    w2 = jnp.transpose(w_pair, (0, 3, 4, 2, 1)).reshape(g, kh * kw * i, o)
    w2 = w2 * scale[:, None, :]
    if cin_flow != i:  # input tensor's channels are padded; pad weight rows
        w2 = w2.reshape(g, kh * kw, i, o)
        w2 = jnp.pad(w2, ((0, 0), (0, 0), (0, cin_flow - i), (0, 0)))
        w2 = w2.reshape(g, kh * kw * cin_flow, o)
    k_real = kh * kw * cin_flow
    k_pad = _round_up(k_real, 128)
    n_pad = _round_up(o, 128)
    w2 = jnp.pad(w2, ((0, 0), (0, k_pad - k_real), (0, n_pad - o)))
    b2 = jnp.pad(bias, ((0, 0), (0, n_pad - o)))
    return {'w': w2.astype(jnp.bfloat16),
            'b': b2.reshape(g, 1, n_pad).astype(jnp.float32),
            'kh': kh, 'kw': kw}


def prepare_dual_params(raw):
    """Stack the two backbones, fold BN, pad & cast — done once, not per call."""
    r, d = raw['backbone'], raw['backbone_d']

    def conv(wr, wd, bnr, bnd, cin_flow, stride, padding):
        w_pair = jnp.stack([wr, wd])
        bn_pair = {k: jnp.stack([bnr[k], bnd[k]]) for k in bnr}
        cp = _fold_conv_bn(w_pair, bn_pair, cin_flow)
        cp.update(stride=stride, pad=padding)
        return cp

    prepared = {'stem': conv(r['conv1'], d['conv1'], r['bn1'], d['bn1'],
                             cin_flow=3, stride=2, padding=3)}
    cin_flow = _round_up(64, 128)          # stem output channels (padded)
    layers = []
    for li in range(4):
        blocks = []
        for bi in range(len(r['layers'][li])):
            br, bd = r['layers'][li][bi], d['layers'][li][bi]
            s = br['stride']
            planes_pad = _round_up(br['conv1'].shape[0], 128)
            blk = {
                'conv1': conv(br['conv1'], bd['conv1'], br['bn1'], bd['bn1'],
                              cin_flow, 1, 0),
                'conv2': conv(br['conv2'], bd['conv2'], br['bn2'], bd['bn2'],
                              planes_pad, s, 1),
                'conv3': conv(br['conv3'], bd['conv3'], br['bn3'], bd['bn3'],
                              planes_pad, 1, 0),
            }
            if 'ds_conv' in br:
                blk['ds'] = conv(br['ds_conv'], bd['ds_conv'],
                                 br['ds_bn'], bd['ds_bn'], cin_flow, s, 0)
            blocks.append(blk)
            cin_flow = _round_up(br['conv3'].shape[0], 128)
        layers.append(blocks)
    prepared['layers'] = layers
    return prepared


# ----------------------------------------------------------------------------
# DualResNet forward
# ----------------------------------------------------------------------------
def dual_resnet_forward(prepared, x_rgb, x_d):
    """x_rgb, x_d: NCHW float32 (PyTorch convention).  Returns (out1..out4) NCHW."""
    xr = jnp.transpose(x_rgb, (0, 2, 3, 1))
    xd = jnp.transpose(x_d, (0, 2, 3, 1))
    x = jnp.stack([xr, xd]).astype(jnp.bfloat16)       # (2, B, H, W, 3)

    # stem: 7x7/s2 conv + BN + ReLU, then 3x3/s2 maxpool
    x = dual_conv_bn(x, prepared['stem'], relu=True)   # (2, B, H/2, W/2, 128)
    g, b, h, w, c = x.shape
    x = maxpool_3x3_s2(x.reshape(g * b, h, w, c))
    x = x.reshape(g, b, x.shape[1], x.shape[2], c)

    outs = []
    for li in range(4):
        for blk in prepared['layers'][li]:
            x = dual_bottleneck(x, blk)
        # TODO(synk): FRM (feature rectification) definition is not in the
        # provided source; identity pass-through is used here.
        fused = ffm_fuse(x)                            # FFM placeholder
        outs.append(jnp.transpose(fused, (0, 3, 1, 2)))  # back to NCHW
    return tuple(outs)


# ----------------------------------------------------------------------------
if __name__ == "__main__":
    key = jax.random.PRNGKey(0)
    kp, kr, kd = jax.random.split(key, 3)

    raw_params = init_dual_resnet(kp)
    prepared = prepare_dual_params(raw_params)   # fold BN / pad / cast once

    B, C, H, W = 2, 3, 32, 32
    x_rgb = jax.random.normal(kr, (B, C, H, W), jnp.float32)
    x_d = jax.random.normal(kd, (B, C, H, W), jnp.float32)

    out1, out2, out3, out4 = dual_resnet_forward(prepared, x_rgb, x_d)
    jax.block_until_ready((out1, out2, out3, out4))

    assert out1.shape == (B, 256, 8, 8)
    assert out2.shape == (B, 512, 4, 4)
    assert out3.shape == (B, 1024, 2, 2)
    assert out4.shape == (B, 2048, 1, 1)
    assert all(bool(jnp.all(jnp.isfinite(o))) for o in (out1, out2, out3, out4))

    print("KERNEL_OK")
</pallas_src>

<mosaic_0001>
module attributes {stable_mosaic.version = 11 : i64} {
  func.func @_mm_kernel(%arg0: i32, %arg1: i32, %arg2: i32, %arg3: i32, %arg4: memref<1x256x256xbf16, #tpu.memory_space<vmem>>, %arg5: memref<1x256x128xbf16, #tpu.memory_space<vmem>>, %arg6: memref<1x1x128xf32, #tpu.memory_space<vmem>>, %arg7: memref<1x256x128xbf16, #tpu.memory_space<vmem>>, %arg8: memref<256x128xf32, #tpu.memory_space<vmem>>) attributes {dimension_semantics = [#tpu.dimension_semantics<parallel>, #tpu.dimension_semantics<parallel>, #tpu.dimension_semantics<parallel>, #tpu.dimension_semantics<arbitrary>], iteration_bounds = array<i64: 2, 2, 1, 1>, scalar_prefetch = 0 : i64, scratch_operands = 1 : i64, tpu.core_type = #tpu.core_type<tc>, window_params = [{transform_indices = @transform_0, window_bounds = array<i64: 1, 256, 256>}, {transform_indices = @transform_1, window_bounds = array<i64: 1, 256, 128>}, {transform_indices = @transform_2, window_bounds = array<i64: 1, 1, 128>}, {transform_indices = @transform_3, window_bounds = array<i64: 1, 256, 128>}]} {
    %c0_i32 = arith.constant 0 : i32
    %0 = arith.cmpi eq, %arg3, %c0_i32 : i32
    %1 = arith.extui %0 : i1 to i32
    %c0_i32_0 = arith.constant 0 : i32
    %2 = arith.cmpi ne, %1, %c0_i32_0 : i32
    scf.if %2 {
      %cst_12 = arith.constant 0.000000e+00 : f32
      %14 = vector.broadcast %cst_12 : f32 to vector<256x128xf32>
      %c0_13 = arith.constant 0 : index
      %c0_14 = arith.constant 0 : index
      %15 = vector.load %arg8[%c0_13, %c0_14] : memref<256x128xf32, #tpu.memory_space<vmem>>, vector<256x128xf32>
      tpu.vector_store %arg8[%c0_13, %c0_14], %14 {strides = array<i32>} : memref<256x128xf32, #tpu.memory_space<vmem>>, vector<256x128xf32>,
    } else {
    }
    %c0 = arith.constant 0 : index
    %c0_1 = arith.constant 0 : index
    %3 = vector.load %arg8[%c0, %c0_1] : memref<256x128xf32, #tpu.memory_space<vmem>>, vector<256x128xf32>
    %c0_2 = arith.constant 0 : index
    %c0_3 = arith.constant 0 : index
    %c0_4 = arith.constant 0 : index
    %4 = vector.load %arg4[%c0_2, %c0_3, %c0_4] : memref<1x256x256xbf16, #tpu.memory_space<vmem>>, vector<1x256x256xbf16>
    %5 = vector.shape_cast %4 : vector<1x256x256xbf16> to vector<256x256xbf16>
    %c0_5 = arith.constant 0 : index
    %c0_6 = arith.constant 0 : index
    %c0_7 = arith.constant 0 : index
    %6 = vector.load %arg5[%c0_5, %c0_6, %c0_7] : memref<1x256x128xbf16, #tpu.memory_space<vmem>>, vector<1x256x128xbf16>
    %7 = vector.shape_cast %6 : vector<1x256x128xbf16> to vector<256x128xbf16>
    %cst = arith.constant dense<0.000000e+00> : vector<256x128xf32>
    %8 = tpu.matmul %5, %7, %cst {dimension_numbers = #tpu.dot_dimension_numbers<[1], [0], [0], [1], [0, 0, 1, 1], [], []>} : vector<256x256xbf16>, vector<256x128xbf16>, vector<256x128xf32> -> vector<256x128xf32>
    %9 = arith.addf %3, %8 : vector<256x128xf32>
    %c0_8 = arith.constant 0 : index
    %c0_9 = arith.constant 0 : index
    %10 = vector.load %arg8[%c0_8, %c0_9] : memref<256x128xf32, #tpu.memory_space<vmem>>, vector<256x128xf32>
    tpu.vector_store %arg8[%c0_8, %c0_9], %9 {strides = array<i32>} : memref<256x128xf32, #tpu.memory_space<vmem>>, vector<256x128xf32>,
    %c0_i32_10 = arith.constant 0 : i32
    %11 = arith.cmpi eq, %arg3, %c0_i32_10 : i32
    %12 = arith.extui %11 : i1 to i32
    %c0_i32_11 = arith.constant 0 : i32
    %13 = arith.cmpi ne, %12, %c0_i32_11 : i32
    scf.if %13 {
      %c0_12 = arith.constant 0 : index
      %c0_13 = arith.constant 0 : index
      %14 = vector.load %arg8[%c0_12, %c0_13] : memref<256x128xf32, #tpu.memory_space<vmem>>, vector<256x128xf32>
      %c0_14 = arith.constant 0 : index
      %c0_15 = arith.constant 0 : index
      %c0_16 = arith.constant 0 : index
      %15 = vector.load %arg6[%c0_14, %c0_15, %c0_16] : memref<1x1x128xf32, #tpu.memory_space<vmem>>, vector<1x1x128xf32>
      %16 = vector.shape_cast %15 : vector<1x1x128xf32> to vector<1x128xf32>
      %17 = vector.broadcast %16 : vector<1x128xf32> to vector<256x128xf32>
      %18 = arith.addf %14, %17 : vector<256x128xf32>
      %cst_17 = arith.constant 0.000000e+00 : f32
      %19 = vector.broadcast %cst_17 : f32 to vector<256x128xf32>
      %20 = arith.maximumf %18, %19 : vector<256x128xf32>
      %21 = arith.truncf %20 : vector<256x128xf32> to vector<256x128xbf16>
      %c0_18 = arith.constant 0 : index
      %c0_19 = arith.constant 0 : index
      %c0_20 = arith.constant 0 : index
      %22 = vector.load %arg7[%c0_18, %c0_19, %c0_20] : memref<1x256x128xbf16, #tpu.memory_space<vmem>>, vector<1x256x128xbf16>
      %23 = vector.shape_cast %22 : vector<1x256x128xbf16> to vector<256x128xbf16>
      %24 = vector.shape_cast %21 : vector<256x128xbf16> to vector<1x256x128xbf16>
      tpu.vector_store %arg7[%c0_18, %c0_19, %c0_20], %24 {strides = array<i32>} : memref<1x256x128xbf16, #tpu.memory_space<vmem>>, vector<1x256x128xbf16>,
    } else {
    }
    return
  }
  func.func @transform_0(%arg0: i32, %arg1: i32, %arg2: i32, %arg3: i32) -> (i32, i32, i32) {
    %c0_i32 = arith.constant 0 : i32
    return %arg0, %arg1, %arg3 : i32, i32, i32
  }
  func.func @transform_1(%arg0: i32, %arg1: i32, %arg2: i32, %arg3: i32) -> (i32, i32, i32) {
    %c0_i32 = arith.constant 0 : i32
    return %arg0, %arg3, %arg2 : i32, i32, i32
  }
  func.func @transform_2(%arg0: i32, %arg1: i32, %arg2: i32, %arg3: i32) -> (i32, i32, i32) {
    %c0_i32 = arith.constant 0 : i32
    %c0_i32_0 = arith.constant 0 : i32
    return %arg0, %c0_i32, %arg2 : i32, i32, i32
  }
  func.func @transform_3(%arg0: i32, %arg1: i32, %arg2: i32, %arg3: i32) -> (i32, i32, i32) {
    %c0_i32 = arith.constant 0 : i32
    return %arg0, %arg1, %arg2 : i32, i32, i32
  }
}

</mosaic_0001>

<bundles_post_ra>
// kernel: tpu_custom_call.1
= control target key start
LH: loop header
LB: loop body
LE: loop exit
PB: predicated region body
PF: predicated region fallthrough
CT: control target
= control target key end

     0   :  { %s2402_s0 = inlined_call_operand.hbm [shape: bf16[2,512,256], index: 0, kind: input, shape index: {}]   ;;  %s2403_s1 = inlined_call_operand.hbm [shape: bf16[2,256,128], index: 1, kind: input, shape index: {}]   ;;  %s2404_s2 = inlined_call_operand.hbm [shape: f32[2,1,128], index: 2, kind: input, shape index: {}]   ;;  %s2405_s3 = inlined_call_operand.hbm [shape: bf16[2,512,128], index: 3, kind: output, shape index: {}]  }
   0x1   :  { %2420 = sst [smem:[#allocation24_spill]] %s2403_s1 }
   0x2   :  { %2421 = sst [smem:[#allocation25_spill]] %s2405_s3 }
   0x3   :  { %8 = vsyncpa [#allocation4], 0 }
   0x4   :  { %10 = vsyncpa [#allocation4 + $0x1], 0 }
   0x5   :  { %11 = vsyncpa [#allocation7], 0 }
   0x6   :  { %13 = vsyncpa [#allocation7 + $0x1], 0 }
   0x7   :  { %14 = vsyncpa [#allocation5], 0 }
   0x8   :  { %16 = vsyncpa [#allocation5 + $0x1], 0  ;;  %s2015_s12 = smov 0   ;;  %s2017_s13 = smov 0  }
   0x9   :  { %s2019_s14 = smov 0   ;;  %s2021_s15 = smov 0  }
   0xa   :  { %s2023_s16 = smov 0   ;;  %s2025_s17 = smov 0  }
   0xb   :  { %s2027_s18 = smov 0   ;;  %s2029_s19 = smov 0  }
   0xc   :  { %s2031_s20 = smov 0   ;;  %s2033_s21 = smov 0  }
   0xd   :  { %s2035_s22 = smov 0  }
   0xe LB: > { %2422 = sst [smem:[#allocation13_spill]] %s1959_s15  ;;  %s2069_s23 = sadd.s32 4294967295, %s1987_s22   ;;  %s1987_s22 = sphi %s2035_s22, %s22_s22   ;;  %s1983_s21 = sphi %s2033_s21, %s2465_s21   ;;  %s1979_s20 = sphi %s2031_s20, %s2457_s20   ;;  %s1975_s19 = sphi %s2029_s19, %s2464_s19   ;;  %s1971_s18 = sphi %s2027_s18, %s2456_s18   ;;  %s1967_s17 = sphi %s2025_s17, %s2455_s17   ;;  %s1963_s16 = sphi %s2023_s16, %s2463_s16   ;;  %s1959_s15 = sphi %s2021_s15, %s2462_s15   ;;  %s1955_s14 = sphi %s2019_s14, %s2461_s14   ;;  %s1951_s13 = sphi %s2017_s13, %s2460_s13   ;;  %s1947_s12 = sphi %s2015_s12, %s2459_s12  }
   0xf   : > { %2423 = sst [smem:[#allocation14_spill]] %s1967_s17  ;;  %s48_s24 = sadd.s32 1, %s1983_s21 }
  0x10   : > { %2424 = sst [smem:[#allocation15_spill]] %s1971_s18  ;;  %p67_p0 = scmp.eq.s32.totalorder %s1987_s22, 0 }
  0x11   : > { %2425 = sst [smem:[#allocation16_spill]] %s1975_s19  ;;  %p73_p1 = scmp.eq.s32.totalorder %s2069_s23, 0 }
  0x12   : > { %2426 = sst [smem:[#allocation17_spill]] %s1979_s20  ;;  %p96_p2 = scmp.ne.s32.totalorder %s1955_s14, %s1951_s13 }
  0x13   : > { %p102_p3 = scmp.ne.s32.totalorder %s1951_s13, %s1947_s12  ;;  %p2406_p5 = scmp.lt.s32.totalorder %s1987_s22, 4 }
  0x14   : > { %p2080_p4 = por %p96_p2, %p67_p0  ;;  %s2408_s28 = sshll.u32 %s1983_s21, 7 }
  0x15   : > { %p2087_p6 = por %p102_p3, %p73_p1  ;;  %s211_s29 = sand.u32 1, %s1987_s22  }
  0x16   : > { %s2407_s30 = sand.u32 1, %s1955_s14   ;;  %s2430_s1 = sld [smem:[#allocation24_spill]] }
  0x17   : > { %s2428_s27 = scalar_select %p2087_p6, 1, 0 }
  0x18   : > { %s1286_s4 = sshll.u32 %s2407_s30, 7  ;;  %p2105_p7 = pnand %p2406_p5, %p2080_p4 }
  0x19   : > { %2429 = sst [smem:[#allocation18_spill]] %s2428_s27  ;;  %s215_s9 = scalar_lea.vmem [#allocation6], %s1286_s4 }
  0x1a   : > { %s226_s10 = sshll.u32 %s215_s9, 4  ;;  %p1289_p8 = scmp.ge.s32.totalorder %s1987_s22, 1  ;;  %s227_s10 = int_to_ptr.vmem [resolvable:$true] %s226_s10 }
  0x1b   : > { %p252_p9 = scmp.lt.s32.totalorder %s1987_s22, 5  ;;  %s2111_s12 = scalar_lea.sflag [#allocation7], %s211_s29 }
  0x1c   : > { %s223_s7 = scalar_lea.hbm %s2430_s1, %s2408_s28  ;;  %s1989_s4 = smov 64  }
  0x1d   : > { %s224_s8 = sshll.u32 %s223_s7, 4  ;;  %s1990_s5 = smov 4   ;;  %s225_s8 = int_to_ptr.hbm [resolvable:$true] %s224_s8 }
  0x1e   : > { %1666 = dma.hbm_to_vmem [thread:$0]  (!%p2105_p7), %s225_s8, 2048, %s227_s10, %s2111_s12, %s1989_s4, %s1989_s4, %s1990_s5  }
  0x1f   : > { %p2116_p10 = pnand %p1289_p8, %p252_p9  ;;  %s1278_s6 = sadd.s32 4294967294, %s1987_s22  }
  0x20   : > { %s44_s7 = sadd.s32 1, %s1979_s20  ;;  %s59_s9 = sadd.s32 1, %s1967_s17 }
  0x21   : > { %p46_p11 = scmp.ge.s32.totalorder %s44_s7, 2  ;;  %p66_p12 = scmp.ne.s32.totalorder %s1967_s17, %s1963_s16 }
  0x22   : > { %p72_p13 = scmp.ne.s32.totalorder %s1963_s16, %s1959_s15  ;;  %p158_p2 = scmp.eq.s32.totalorder %s2069_s23, 3 }
  0x23   : > { %s2467_s7 = smov (%p46_p11, %s44_s7), 0  ;;  %s2469_s24 = smov (!%p46_p11, %s48_s24), %s1983_s21 }
  0x24   : > { %2433 = sst [smem:[#allocation19_spill]] %s2467_s7  ;;  %s53_s29 = ssub.s32 %s1979_s20, %s2467_s7 }
  0x25   : > { %p2137_p3 = por %p67_p0, %p66_p12  ;;  %p50_p4 = scmp.ge.s32.totalorder %s2469_s24, 2 }
  0x26   : > { %p2143_p8 = por %p73_p1, %p72_p13  ;;  %p2147_p9 = por %p158_p2, %p66_p12 }
  0x27   : > { %p164_p11 = scmp.eq.s32.totalorder %s1278_s6, 3  ;;  %s2471_s24 = smov (%p50_p4, %s2469_s24), 0 }
  0x28   : > { %s2436_s4 = scalar_select %p2147_p9, 1, 0 }
  0x29   : > { %2438 = sst [smem:[#allocation21_spill]] %s2471_s24  ;;  %p2153_p5 = por %p164_p11, %p72_p13 }
  0x2a   : > { %2437 = sst [smem:[#allocation20_spill]] %s2436_s4  ;;  %s184_s30 = sand.u32 1, %s1967_s17  }
  0x2b   : > { %s2439_s5 = scalar_select %p2153_p5, 1, 0 }
  0x2c   : > { %s52_s28 = ssub.s32 %s1983_s21, %s2471_s24  ;;  %s1281_s1 = sshll.u32 %s184_s30, 8 }
  0x2d   : > { %2440 = sst [smem:[#allocation22_spill]] %s2439_s5  ;;  %s54_s25 = sor.u32 %s53_s29, %s52_s28 }
  0x2e   : > { %p87_p0 = scmp.eq.s32.totalorder %s52_s28, 0  ;;  %p57_p1 = scmp.eq.s32.totalorder %s54_s25, 0 }
  0x2f   : > { %s2441_s7 = sadd.s32 1, %s1955_s14  ;;  %s1491_s4 = sshll.u32 %s1979_s20, 6 }
  0x30   : > { %s2163_s15 = scalar_select %p87_p0, %s1955_s14, %s2441_s7  }
  0x31   : > { %s2166_s6 = scalar_select %p57_p1, %s1967_s17, %s59_s9  }
  0x32   : > { %s2443_s3 = sshll.u32 %s1983_s21, 7  ;;  %s188_s18 = scalar_lea.vmem [#allocation3], %s1281_s1 }
  0x33   : > { %2442 = sst [smem:[#allocation23_spill]] %s2166_s6  ;;  %s196_s19 = sadd.s32 %s1491_s4, %s2443_s3 }
  0x34   : > { %s201_s5 = sshll.u32 %s188_s18, 4  ;;  %s1285_s27 = sshll.u32 %s196_s19, 2  ;;  %s202_s5 = int_to_ptr.vmem [resolvable:$true] %s201_s5 }
  0x35   : > { %s198_s25 = scalar_lea.hbm %s2402_s0, %s1285_s27  ;;  %p2444_p12 = scmp.lt.s32.totalorder %s1987_s22, 4 }
  0x36   : > { %s199_s7 = sshll.u32 %s198_s25, 4  ;;  %s185_s9 = scalar_lea.sflag [#allocation4], %s184_s30  ;;  %s200_s7 = int_to_ptr.hbm [resolvable:$true] %s199_s7 }
  0x37   : > { %p1661_p13 = pnand %p2444_p12, %p2137_p3  ;;  %s1991_s24 = smov 128  }
  0x38   : > { %s1992_s20 = smov 8   ;;  %s243_s18 = scalar_lea.hbm %s2404_s2, %s1983_s21 }
  0x39   : > { %1663 = dma.hbm_to_vmem [thread:$0]  (!%p1661_p13), %s200_s7, 4096, %s202_s5, %s185_s9, %s1991_s24, %s1991_s24, %s1992_s20  }
  0x3a   : > { %s2445_s19 = sand.u32 1, %s1955_s14   ;;  %s245_s17 = sshll.u32 %s243_s18, 4  ;;  %s246_s17 = int_to_ptr.hbm [resolvable:$true] %s245_s17 }
  0x3b   : > { %s239_s4 = scalar_lea.vmem [#allocation8], %s2445_s19  ;;  %256 = sbr.rel (%p2116_p10) target bundleno = 366 (0x16e), region = 32 }
  0x3c   : > { %s247_s6 = sshll.u32 %s239_s4, 4  ;;  %s2190_s27 = sand.u32 (!%p2116_p10), 1, %s1963_s16   ;;  %s248_s6 = int_to_ptr.vmem [resolvable:$true] %s247_s6 }
  0x3d   : > { %1669 = dma.hbm_to_vmem [thread:$0]  (!%p2105_p7), %s246_s17, 16, %s248_s6, %s2111_s12  }
  0x3e   : > { %s1290_s20 = sshll.u32 (!%p2116_p10), %s2190_s27, 8  ;;  %s259_s24 = scalar_lea.sflag (!%p2116_p10), [#allocation4], %s2190_s27 }
  0x3f   : > { %s2194_s30 = scalar_lea.vmem (!%p2116_p10), [#allocation3], %s1290_s20 }
  0x40   : > { %1934 = dma.done.wait (%p2143_p8), %s259_s24, 4096  }
  0x41   : > { %1936 = vsyncadd (%p2143_p8), %s259_s24, 4294963200  ;;  %s268_s11 = sand.u32 1, %s2069_s23   ;;  %s270_s12 = sand.u32 1, %s1951_s13  }
  0x42   : > { %s1291_s26 = sshll.u32 %s270_s12, 7  ;;  %s269_s8 = scalar_lea.sflag [#allocation7], %s268_s11 }
  0x43   : > { %s2204_s5 = scalar_lea.vmem [#allocation6], %s1291_s26 }
  0x44   : > { %1938 = dma.done.wait (%p2087_p6), %s269_s8, 2064  }
  0x45   : > { %1940 = vsyncadd (%p2087_p6), %s269_s8, 4294965232  ;;  %v1532_v0 = vld [vmem:[%s2204_s5 + $0x38] sm:$0xff]  ;;  %v1531_v2 = vld [vmem:[%s2204_s5 + $0x30] sm:$0xff]  ;;  %s2236_s23 = scalar_lea.vmem [#allocation8], %s270_s12  ;;  %s1292_s10 = sshll.u32 %s2190_s27, 7 }
  0x46   : > { %v1540_v1 = vld [vmem:[%s2204_s5 + $0x78] sm:$0xff]  ;;  %706 = vmatpush.bf16.msra.mxu0 %v1532_v0  ;;  %1636 = vmatpush.bf16.msra.mxu2 %v1532_v0  ;;  %v1539_v3 = vld [vmem:[%s2204_s5 + $0x70] sm:$0xff]  ;;  %v1530_v4 = vld [vmem:[%s2204_s5 + $0x28] sm:$0xff]  ;;  %s2301_s6 = scalar_lea.vmem [#allocation9], %s1292_s10  ;;  %s2447_s29 = sld [smem:[#allocation15_spill]] }
  0x47   : > { %795 = vmatpush.bf16.msra.mxu1 %v1540_v1  ;;  %1644 = vmatpush.bf16.msra.mxu3 %v1540_v1  ;;  %v1538_v5 = vld [vmem:[%s2204_s5 + $0x68] sm:$0xff]  ;;  %v1529_v6 = vld [vmem:[%s2204_s5 + $0x20] sm:$0xff]  ;;  %v1528_v8 = vld [vmem:[%s2204_s5 + $0x18] sm:$0xff]  ;;  %s2448_s28 = sld [smem:[#allocation16_spill]]  ;;  %s1116_s11 = scalar_lea.sflag [#allocation5], %s2190_s27 }
  0x48   : > { %v1537_v7 = vld [vmem:[%s2204_s5 + $0x60] sm:$0xff]  ;;  %v1536_v9 = vld [vmem:[%s2204_s5 + $0x58] sm:$0xff]  ;;  %v1527_v10 = vld [vmem:[%s2204_s5 + $0x10] sm:$0xff]  ;;  %s2449_s19 = sld [smem:[#allocation25_spill]] }
  0x49   : > { %v1535_v11 = vld [vmem:[%s2204_s5 + $0x50] sm:$0xff]  ;;  %v1526_v12 = vld [vmem:[%s2204_s5 + $0x8] sm:$0xff]  ;;  %v1525_v14 = vld [vmem:[%s2204_s5] sm:$0xff] }
  0x4a   : > { %707 = vmatpush.bf16.msra.mxu0 %v1531_v2  ;;  %1637 = vmatpush.bf16.msra.mxu2 %v1531_v2  ;;  %v1534_v13 = vld [vmem:[%s2204_s5 + $0x48] sm:$0xff]  ;;  %v1533_v15 = vld [vmem:[%s2204_s5 + $0x40] sm:$0xff]  ;;  %v1303_v28 = vld [vmem:[%s2194_s30 + $0x10] sm:$0xf] }
  0x4b   : > { %796 = vmatpush.bf16.msra.mxu1 %v1539_v3  ;;  %1645 = vmatpush.bf16.msra.mxu3 %v1539_v3  ;;  %v1295_v16 = vld [vmem:[%s2194_s30] sm:$0xf]  ;;  %v1494_v17 = vld [vmem:[%s2194_s30 + $0x4] sm:$0xf0]  ;;  %v1493_v20 = vld [vmem:[%s2194_s30 + $0x4] sm:$0xf] }
  0x4c   : > { %v1359_v18 = vld [vmem:[%s2194_s30 + $0x80] sm:$0xf]  ;;  %v1510_v19 = vld [vmem:[%s2194_s30 + $0x84] sm:$0xf0]  ;;  %v1297_v21 = vld [vmem:[%s2194_s30 + $0x8] sm:$0xf0]  ;;  %v1296_v24 = vor.u32 %v1494_v17, %v1295_v16 }
  0x4d   : > { %v1509_v22 = vld [vmem:[%s2194_s30 + $0x84] sm:$0xf]  ;;  %v1361_v23 = vld [vmem:[%s2194_s30 + $0x88] sm:$0xf0]  ;;  %v1360_v25 = vor.u32 %v1510_v19, %v1359_v18  ;;  %v1300_v26 = vor.u32 %v1493_v20, %v1297_v21  ;;  %v1496_v29 = vld [vmem:[%s2194_s30 + $0x14] sm:$0xf0] }
  0x4e   : > { %708 = vmatpush.bf16.msra.mxu0 %v1530_v4  ;;  %1638 = vmatpush.bf16.msra.mxu2 %v1530_v4  ;;  %v1364_v27 = vor.u32 %v1509_v22, %v1361_v23  ;;  %v1367_v30 = vld [vmem:[%s2194_s30 + $0x90] sm:$0xf]  ;;  %v1512_v31 = vld [vmem:[%s2194_s30 + $0x94] sm:$0xf0]  ;;  %v1495_v32 = vld [vmem:[%s2194_s30 + $0x14] sm:$0xf]  ;;  %v1304_v36 = vor.u32 %v1496_v29, %v1303_v28  ;;  %s2450_s4 = smov %s2449_s19 }
  0x4f   : > { %797 = vmatpush.bf16.msra.mxu1 %v1538_v5  ;;  %1646 = vmatpush.bf16.msra.mxu3 %v1538_v5  ;;  %v1305_v33 = vld [vmem:[%s2194_s30 + $0x18] sm:$0xf0]  ;;  %v1511_v34 = vld [vmem:[%s2194_s30 + $0x94] sm:$0xf]  ;;  %v1368_v37 = vor.u32 %v1512_v31, %v1367_v30  ;;  %v1311_v40 = vld [vmem:[%s2194_s30 + $0x20] sm:$0xf] }
  0x50   : > { %v1369_v35 = vld [vmem:[%s2194_s30 + $0x98] sm:$0xf0]  ;;  %v1308_v38 = vor.u32 %v1495_v32, %v1305_v33  ;;  %v1498_v41 = vld [vmem:[%s2194_s30 + $0x24] sm:$0xf0]  ;;  %v1375_v42 = vld [vmem:[%s2194_s30 + $0xa0] sm:$0xf] }
  0x51   : > { %v1372_v39 = vor.u32 %v1511_v34, %v1369_v35  ;;  %v1514_v43 = vld [vmem:[%s2194_s30 + $0xa4] sm:$0xf0]  ;;  %v1497_v44 = vld [vmem:[%s2194_s30 + $0x24] sm:$0xf]  ;;  %v1313_v45 = vld [vmem:[%s2194_s30 + $0x28] sm:$0xf0]  ;;  %v1312_v48 = vor.u32 %v1498_v41, %v1311_v40 }
  0x52   : > { %709 = vmatpush.bf16.msra.mxu0 %v1529_v6  ;;  %1639 = vmatpush.bf16.msra.mxu2 %v1529_v6  ;;  %v1513_v46 = vld [vmem:[%s2194_s30 + $0xa4] sm:$0xf]  ;;  %v1377_v47 = vld [vmem:[%s2194_s30 + $0xa8] sm:$0xf0]  ;;  %v1376_v49 = vor.u32 %v1514_v43, %v1375_v42  ;;  %v1316_v50 = vor.u32 %v1497_v44, %v1313_v45  ;;  %v1319_v52 = vld [vmem:[%s2194_s30 + $0x30] sm:$0xf] }
  0x53   : > { %798 = vmatpush.bf16.msra.mxu1 %v1537_v7  ;;  %1647 = vmatpush.bf16.msra.mxu3 %v1537_v7  ;;  %v1380_v51 = vor.u32 %v1513_v46, %v1377_v47  ;;  %v1500_v53 = vld [vmem:[%s2194_s30 + $0x34] sm:$0xf0]  ;;  %v1383_v54 = vld [vmem:[%s2194_s30 + $0xb0] sm:$0xf]  ;;  %v1499_v56 = vld [vmem:[%s2194_s30 + $0x34] sm:$0xf] }
  0x54   : > { %v1516_v55 = vld [vmem:[%s2194_s30 + $0xb4] sm:$0xf0]  ;;  %v1321_v57 = vld [vmem:[%s2194_s30 + $0x38] sm:$0xf0]  ;;  %v1515_v58 = vld [vmem:[%s2194_s30 + $0xb4] sm:$0xf]  ;;  %v1320_v60 = vor.u32 %v1500_v53, %v1319_v52 }
  0x55   : > { %v1385_v59 = vld [vmem:[%s2194_s30 + $0xb8] sm:$0xf0]  ;;  %v1384_v61 = vor.u32 %v1516_v55, %v1383_v54  ;;  %v1324_v62 = vor.u32 %v1499_v56, %v1321_v57  ;;  %v1327_v0 = vld [vmem:[%s2194_s30 + $0x40] sm:$0xf]  ;;  %v1502_v1 = vld [vmem:[%s2194_s30 + $0x44] sm:$0xf0] }
  0x56   : > { %710 = vmatpush.bf16.msra.mxu0 %v1528_v8  ;;  %1640 = vmatpush.bf16.msra.mxu2 %v1528_v8  ;;  %v1388_v63 = vor.u32 %v1515_v58, %v1385_v59  ;;  %v1391_v2 = vld [vmem:[%s2194_s30 + $0xc0] sm:$0xf]  ;;  %v1518_v3 = vld [vmem:[%s2194_s30 + $0xc4] sm:$0xf0]  ;;  %v1501_v4 = vld [vmem:[%s2194_s30 + $0x44] sm:$0xf]  ;;  %v1328_v8 = vor.u32 %v1502_v1, %v1327_v0 }
  0x57   : > { %799 = vmatpush.bf16.msra.mxu1 %v1536_v9  ;;  %1648 = vmatpush.bf16.msra.mxu3 %v1536_v9  ;;  %v1329_v5 = vld [vmem:[%s2194_s30 + $0x48] sm:$0xf0]  ;;  %v1517_v6 = vld [vmem:[%s2194_s30 + $0xc4] sm:$0xf]  ;;  %v1392_v9 = vor.u32 %v1518_v3, %v1391_v2  ;;  %v1503_v16 = vld [vmem:[%s2194_s30 + $0x54] sm:$0xf] }
  0x58   : > { %v1393_v7 = vld [vmem:[%s2194_s30 + $0xc8] sm:$0xf0]  ;;  %v1337_v17 = vld [vmem:[%s2194_s30 + $0x58] sm:$0xf0]  ;;  %v1519_v18 = vld [vmem:[%s2194_s30 + $0xd4] sm:$0xf] }
  0x59   : > { %v1401_v19 = vld [vmem:[%s2194_s30 + $0xd8] sm:$0xf0]  ;;  %v1340_v22 = vor.u32 %v1503_v16, %v1337_v17  ;;  %v1505_v28 = vld [vmem:[%s2194_s30 + $0x64] sm:$0xf]  ;;  %v1345_v29 = vld [vmem:[%s2194_s30 + $0x68] sm:$0xf0] }
  0x5a   : > { %711 = vmatpush.bf16.msra.mxu0 %v1527_v10  ;;  %1641 = vmatpush.bf16.msra.mxu2 %v1527_v10  ;;  %v1332_v10 = vor.u32 %v1501_v4, %v1329_v5  ;;  %v1404_v23 = vor.u32 %v1519_v18, %v1401_v19  ;;  %v1521_v30 = vld [vmem:[%s2194_s30 + $0xe4] sm:$0xf]  ;;  %v1409_v31 = vld [vmem:[%s2194_s30 + $0xe8] sm:$0xf0]  ;;  %v1348_v34 = vor.u32 %v1505_v28, %v1345_v29  ;;  %v1507_v40 = vld [vmem:[%s2194_s30 + $0x74] sm:$0xf] }
  0x5b   : > { %800 = vmatpush.bf16.msra.mxu1 %v1535_v11  ;;  %1649 = vmatpush.bf16.msra.mxu3 %v1535_v11  ;;  %v1396_v11 = vor.u32 %v1517_v6, %v1393_v7  ;;  %v1412_v35 = vor.u32 %v1521_v30, %v1409_v31  ;;  %v1353_v41 = vld [vmem:[%s2194_s30 + $0x78] sm:$0xf0]  ;;  %v1523_v42 = vld [vmem:[%s2194_s30 + $0xf4] sm:$0xf]  ;;  %s1486_s25 = sshll.u32 %s2447_s29, 5  ;;  %s1487_s7 = sshll.u32 %s2448_s28, 6 }
  0x5c   : > { %v1417_v43 = vld [vmem:[%s2194_s30 + $0xf8] sm:$0xf0]  ;;  %v1356_v46 = vor.u32 %v1507_v40, %v1353_v41  ;;  %s1128_s9 = sadd.s32 %s1487_s7, %s1486_s25 }
  0x5d   : > { %v1420_v47 = vor.u32 %v1523_v42, %v1417_v43  ;;  %s1488_s3 = sshll.u32 %s1128_s9, 2 }
  0x5e   : > { %712 = vmatpush.bf16.msra.mxu0 %v1526_v12  ;;  %1642 = vmatpush.bf16.msra.mxu2 %v1526_v12  ;;  %v1335_v12 = vld [vmem:[%s2194_s30 + $0x50] sm:$0xf]  ;;  %s1130_s20 = scalar_lea.hbm %s2449_s19, %s1488_s3 }
  0x5f   : > { %801 = vmatpush.bf16.msra.mxu1 %v1534_v13  ;;  %1650 = vmatpush.bf16.msra.mxu3 %v1534_v13  ;;  %v1504_v13 = vld [vmem:[%s2194_s30 + $0x54] sm:$0xf0]  ;;  %s1133_s17 = sshll.u32 %s1130_s20, 4  ;;  %s1134_s17 = int_to_ptr.hbm [resolvable:$true] %s1133_s17 }
  0x60   : > { %v1336_v20 = vor.u32 %v1504_v13, %v1335_v12  ;;  %s1875_s12 = sshra.s32 %s1134_s17, 4  ;;  %s1876_s12 = int_to_ptr.hbm [resolvable:$true] %s1875_s12 }
  0x61   : > { %s1877_s26 = scalar_lea.hbm %s1876_s12, 128  ;;  %p1882_p2 = scmp.lt.s32.totalorder %s1876_s12, %s2450_s4 }
  0x62   : > { %713 = vmatpush.bf16.msra.mxu0 %v1525_v14  ;;  %1643 = vmatpush.bf16.msra.mxu2 %v1525_v14  ;;  %v1399_v14 = vld [vmem:[%s2194_s30 + $0xd0] sm:$0xf]  ;;  %p1878_p6 = scmp.ne.s32.totalorder %s1876_s12, %s1877_s26 }
  0x63   : > { %802 = vmatpush.bf16.msra.mxu1 %v1533_v15  ;;  %1651 = vmatpush.bf16.msra.mxu3 %v1533_v15  ;;  %v1520_v15 = vld [vmem:[%s2194_s30 + $0xd4] sm:$0xf0] }
  0x64   : > { %v1400_v21 = vor.u32 %v1520_v15, %v1399_v14  ;;  %p1879_p7 = pnand %p1878_p6, %p2147_p9 }
  0x65   : > { %714 = vmatmul.bf16.vlgmr.msra.gmra.mxu0 %v1296_v24  ;;  %754 = vmatmul.bf16.vlgmr.msra.gmra.mxu2 %v1360_v25  ;;  %v1343_v24 = vld [vmem:[%s2194_s30 + $0x60] sm:$0xf]  ;;  %v1506_v25 = vld [vmem:[%s2194_s30 + $0x64] sm:$0xf0] }
  0x66   : > { %803 = vmatmul.bf16.vlgmr.msra.gmra.mxu1 %v1300_v26  ;;  %843 = vmatmul.bf16.vlgmr.msra.gmra.mxu3 %v1364_v27  ;;  %v1407_v26 = vld [vmem:[%s2194_s30 + $0xe0] sm:$0xf]  ;;  %v1522_v27 = vld [vmem:[%s2194_s30 + $0xe4] sm:$0xf0]  ;;  %v1344_v32 = vor.u32 %v1506_v25, %v1343_v24  ;;  %p1880_p10 = pneg %p1879_p7 }
  0x67   : > { %v1408_v33 = vor.u32 %v1522_v27, %v1407_v26 }
  0x75   : > { %719 = vmatmul.bf16.gmra.mxu0 %v1304_v36  ;;  %759 = vmatmul.bf16.gmra.mxu2 %v1368_v37  ;;  %v1351_v36 = vld [vmem:[%s2194_s30 + $0x70] sm:$0xf]  ;;  %v1508_v37 = vld [vmem:[%s2194_s30 + $0x74] sm:$0xf0] }
  0x76   : > { %808 = vmatmul.bf16.gmra.mxu1 %v1308_v38  ;;  %848 = vmatmul.bf16.gmra.mxu3 %v1372_v39  ;;  %v1415_v38 = vld [vmem:[%s2194_s30 + $0xf0] sm:$0xf]  ;;  %v1524_v39 = vld [vmem:[%s2194_s30 + $0xf4] sm:$0xf0]  ;;  %v1352_v44 = vor.u32 %v1508_v37, %v1351_v36  ;;  %s1131_s30 = sshll.u32 %s2301_s6, 4  ;;  %s1132_s30 = int_to_ptr.vmem [resolvable:$true] %s1131_s30 }
  0x77   : > { %v1416_v45 = vor.u32 %v1524_v39, %v1415_v38 }
  0x85   : > { %724 = vmatmul.bf16.gmra.mxu0 %v1312_v48  ;;  %764 = vmatmul.bf16.gmra.mxu2 %v1376_v49 }
  0x86   : > { %813 = vmatmul.bf16.gmra.mxu1 %v1316_v50  ;;  %853 = vmatmul.bf16.gmra.mxu3 %v1380_v51  ;;  %v2295_v51 = vld [vmem:[%s2236_s23] ss:$0 sm:$0xff]  ;;  %s1881_s23 = scalar_lea.hbm %s2450_s4, 512 }
  0x87   : > { %p1883_p3 = scmp.lt.s32.totalorder %s1881_s23, %s1877_s26 }
  0x89   : > { %p1884_p4 = por %p1883_p3, %p1882_p2 }
  0x8b   : > { %p1885_p8 = pnand %p1884_p4, %p1880_p10 }
  0x95   : > { %729 = vmatmul.bf16.gmra.mxu0 %v1320_v60  ;;  %769 = vmatmul.bf16.gmra.mxu2 %v1384_v61 }
  0x96   : > { %818 = vmatmul.bf16.gmra.mxu1 %v1324_v62  ;;  %858 = vmatmul.bf16.gmra.mxu3 %v1388_v63 }
  0xa5   : > { %734 = vmatmul.bf16.gmra.mxu0 %v1328_v8  ;;  %774 = vmatmul.bf16.gmra.mxu2 %v1392_v9 }
  0xa6   : > { %823 = vmatmul.bf16.gmra.mxu1 %v1332_v10  ;;  %863 = vmatmul.bf16.gmra.mxu3 %v1396_v11 }
  0xb5   : > { %739 = vmatmul.bf16.gmra.mxu0 %v1336_v20  ;;  %779 = vmatmul.bf16.gmra.mxu2 %v1400_v21 }
  0xb6   : > { %828 = vmatmul.bf16.gmra.mxu1 %v1340_v22  ;;  %868 = vmatmul.bf16.gmra.mxu3 %v1404_v23 }
  0xc5   : > { %744 = vmatmul.bf16.gmra.mxu0 %v1344_v32  ;;  %784 = vmatmul.bf16.gmra.mxu2 %v1408_v33 }
  0xc6   : > { %833 = vmatmul.bf16.gmra.mxu1 %v1348_v34  ;;  %873 = vmatmul.bf16.gmra.mxu3 %v1412_v35 }
  0xd5   : > { %749 = vmatmul.bf16.gmra.mxu0 %v1352_v44  ;;  %789 = vmatmul.bf16.gmra.mxu2 %v1416_v45 }
  0xd6   : > { %838 = vmatmul.bf16.gmra.mxu1 %v1356_v46  ;;  %878 = vmatmul.bf16.gmra.mxu3 %v1420_v47 }
  0xe2   : > { %v715_v48 = vpop.f32.mrf.mxu0 }
  0xe3   : > { %v804_v49 = vpop.f32.mrf.mxu1 }
  0xe4   : > { %v805_v50 = vadd.f32 %v804_v49, %v715_v48 }
  0xe6   : > { %v987_v56 = vadd.f32 %v2295_v51, %v805_v50 }
  0xe8   : > { %v755_v52 = vpop.f32.mrf.mxu2  ;;  %v1019_v60 = vmax.f32 %v987_v56, 0.0 }
  0xe9   : > { %v844_v53 = vpop.f32.mrf.mxu3 }
  0xea   : > { %v717_v54 = vpop.f32.mrf.mxu0  ;;  %v845_v58 = vadd.f32 %v844_v53, %v755_v52 }
  0xeb   : > { %v806_v55 = vpop.f32.mrf.mxu1 }
  0xec   : > { %v807_v57 = vadd.f32 %v806_v55, %v717_v54  ;;  %v1003_v0 = vadd.f32 %v2295_v51, %v845_v58 }
  0xee   : > { %v988_v59 = vadd.f32 %v2295_v51, %v807_v57  ;;  %v1035_v6 = vmax.f32 %v1003_v0, 0.0 }
  0xf0   : > { %v1020_v61 = vmax.f32 %v988_v59, 0.0  ;;  %v757_v62 = vpop.f32.mrf.mxu2 }
  0xf1   : > { %v846_v63 = vpop.f32.mrf.mxu3 }
  0xf2   : > { %v1544_v1 = vpack.c.bf16 %v1020_v61, %v1019_v60  ;;  %v847_v2 = vadd.f32 %v846_v63, %v757_v62  ;;  %v720_v3 = vpop.f32.mrf.mxu0 }
  0xf3   : > { %v809_v4 = vpop.f32.mrf.mxu1 }
  0xf4   : > { %1545 = vst [vmem:[%s2301_s6] sm:$0xff] %v1544_v1   ;;  %v1004_v5 = vadd.f32 %v2295_v51, %v847_v2  ;;  %v810_v9 = vadd.f32 %v809_v4, %v720_v3 }
  0xf6   : > { %v1036_v7 = vmax.f32 %v1004_v5, 0.0  ;;  %v989_v14 = vadd.f32 %v2295_v51, %v810_v9 }
  0xf8   : > { %v1584_v8 = vpack.c.bf16 %v1036_v7, %v1035_v6  ;;  %v760_v10 = vpop.f32.mrf.mxu2  ;;  %v1021_v18 = vmax.f32 %v989_v14, 0.0 }
  0xf9   : > { %v849_v11 = vpop.f32.mrf.mxu3 }
  0xfa   : > { %1628 = vst [vmem:[%s2301_s6 + $0x40] sm:$0xff] %v1584_v8   ;;  %v722_v12 = vpop.f32.mrf.mxu0  ;;  %v850_v16 = vadd.f32 %v849_v11, %v760_v10 }
  0xfb   : > { %v811_v13 = vpop.f32.mrf.mxu1 }
  0xfc   : > { %v812_v15 = vadd.f32 %v811_v13, %v722_v12  ;;  %v1005_v22 = vadd.f32 %v2295_v51, %v850_v16 }
  0xfe   : > { %v990_v17 = vadd.f32 %v2295_v51, %v812_v15  ;;  %v1037_v28 = vmax.f32 %v1005_v22, 0.0 }
 0x100   : > { %v1022_v19 = vmax.f32 %v990_v17, 0.0  ;;  %v762_v20 = vpop.f32.mrf.mxu2 }
 0x101   : > { %v851_v21 = vpop.f32.mrf.mxu3 }
 0x102   : > { %v1549_v23 = vpack.c.bf16 %v1022_v19, %v1021_v18  ;;  %v852_v24 = vadd.f32 %v851_v21, %v762_v20  ;;  %v725_v25 = vpop.f32.mrf.mxu0 }
 0x103   : > { %v814_v26 = vpop.f32.mrf.mxu1 }
 0x104   : > { %1621 = vst [vmem:[%s2301_s6 + $0x8] sm:$0xff] %v1549_v23   ;;  %v1006_v27 = vadd.f32 %v2295_v51, %v852_v24  ;;  %v815_v31 = vadd.f32 %v814_v26, %v725_v25 }
 0x106   : > { %v1038_v29 = vmax.f32 %v1006_v27, 0.0  ;;  %v991_v36 = vadd.f32 %v2295_v51, %v815_v31 }
 0x108   : > { %v1589_v30 = vpack.c.bf16 %v1038_v29, %v1037_v28  ;;  %v765_v32 = vpop.f32.mrf.mxu2  ;;  %v1023_v40 = vmax.f32 %v991_v36, 0.0 }
 0x109   : > { %v854_v33 = vpop.f32.mrf.mxu3 }
 0x10a   : > { %1629 = vst [vmem:[%s2301_s6 + $0x48] sm:$0xff] %v1589_v30   ;;  %v727_v34 = vpop.f32.mrf.mxu0  ;;  %v855_v38 = vadd.f32 %v854_v33, %v765_v32 }
 0x10b   : > { %v816_v35 = vpop.f32.mrf.mxu1 }
 0x10c   : > { %v817_v37 = vadd.f32 %v816_v35, %v727_v34  ;;  %v1007_v44 = vadd.f32 %v2295_v51, %v855_v38 }
 0x10e   : > { %v992_v39 = vadd.f32 %v2295_v51, %v817_v37  ;;  %v1039_v50 = vmax.f32 %v1007_v44, 0.0 }
 0x110   : > { %v1024_v41 = vmax.f32 %v992_v39, 0.0  ;;  %v767_v42 = vpop.f32.mrf.mxu2 }
 0x111   : > { %v856_v43 = vpop.f32.mrf.mxu3 }
 0x112   : > { %v1554_v45 = vpack.c.bf16 %v1024_v41, %v1023_v40  ;;  %v857_v46 = vadd.f32 %v856_v43, %v767_v42  ;;  %v730_v47 = vpop.f32.mrf.mxu0 }
 0x113   : > { %v819_v48 = vpop.f32.mrf.mxu1 }
 0x114   : > { %1622 = vst [vmem:[%s2301_s6 + $0x10] sm:$0xff] %v1554_v45   ;;  %v1008_v49 = vadd.f32 %v2295_v51, %v857_v46  ;;  %v820_v54 = vadd.f32 %v819_v48, %v730_v47 }
 0x116   : > { %v1040_v52 = vmax.f32 %v1008_v49, 0.0  ;;  %v993_v59 = vadd.f32 %v2295_v51, %v820_v54 }
 0x118   : > { %v1594_v53 = vpack.c.bf16 %v1040_v52, %v1039_v50  ;;  %v770_v55 = vpop.f32.mrf.mxu2  ;;  %v1025_v63 = vmax.f32 %v993_v59, 0.0 }
 0x119   : > { %v859_v56 = vpop.f32.mrf.mxu3 }
 0x11a   : > { %1630 = vst [vmem:[%s2301_s6 + $0x50] sm:$0xff] %v1594_v53   ;;  %v732_v57 = vpop.f32.mrf.mxu0  ;;  %v860_v61 = vadd.f32 %v859_v56, %v770_v55 }
 0x11b   : > { %v821_v58 = vpop.f32.mrf.mxu1 }
 0x11c   : > { %v822_v60 = vadd.f32 %v821_v58, %v732_v57  ;;  %v1009_v3 = vadd.f32 %v2295_v51, %v860_v61 }
 0x11e   : > { %v994_v62 = vadd.f32 %v2295_v51, %v822_v60  ;;  %v1041_v9 = vmax.f32 %v1009_v3, 0.0 }
 0x120   : > { %v1026_v0 = vmax.f32 %v994_v62, 0.0  ;;  %v772_v1 = vpop.f32.mrf.mxu2 }
 0x121   : > { %v861_v2 = vpop.f32.mrf.mxu3 }
 0x122   : > { %v1559_v4 = vpack.c.bf16 %v1026_v0, %v1025_v63  ;;  %v862_v5 = vadd.f32 %v861_v2, %v772_v1  ;;  %v735_v6 = vpop.f32.mrf.mxu0 }
 0x123   : > { %v824_v7 = vpop.f32.mrf.mxu1 }
 0x124   : > { %1623 = vst [vmem:[%s2301_s6 + $0x18] sm:$0xff] %v1559_v4   ;;  %v1010_v8 = vadd.f32 %v2295_v51, %v862_v5  ;;  %v825_v12 = vadd.f32 %v824_v7, %v735_v6 }
 0x126   : > { %v1042_v10 = vmax.f32 %v1010_v8, 0.0  ;;  %v995_v17 = vadd.f32 %v2295_v51, %v825_v12 }
 0x128   : > { %v1599_v11 = vpack.c.bf16 %v1042_v10, %v1041_v9  ;;  %v775_v13 = vpop.f32.mrf.mxu2  ;;  %v1027_v21 = vmax.f32 %v995_v17, 0.0 }
 0x129   : > { %v864_v14 = vpop.f32.mrf.mxu3 }
 0x12a   : > { %1631 = vst [vmem:[%s2301_s6 + $0x58] sm:$0xff] %v1599_v11   ;;  %v737_v15 = vpop.f32.mrf.mxu0  ;;  %v865_v19 = vadd.f32 %v864_v14, %v775_v13 }
 0x12b   : > { %v826_v16 = vpop.f32.mrf.mxu1 }
 0x12c   : > { %v827_v18 = vadd.f32 %v826_v16, %v737_v15  ;;  %v1011_v25 = vadd.f32 %v2295_v51, %v865_v19 }
 0x12e   : > { %v996_v20 = vadd.f32 %v2295_v51, %v827_v18  ;;  %v1043_v31 = vmax.f32 %v1011_v25, 0.0 }
 0x130   : > { %v1028_v22 = vmax.f32 %v996_v20, 0.0  ;;  %v777_v23 = vpop.f32.mrf.mxu2 }
 0x131   : > { %v866_v24 = vpop.f32.mrf.mxu3 }
 0x132   : > { %v1564_v26 = vpack.c.bf16 %v1028_v22, %v1027_v21  ;;  %v867_v27 = vadd.f32 %v866_v24, %v777_v23  ;;  %v740_v28 = vpop.f32.mrf.mxu0 }
 0x133   : > { %v829_v29 = vpop.f32.mrf.mxu1 }
 0x134   : > { %1624 = vst [vmem:[%s2301_s6 + $0x20] sm:$0xff] %v1564_v26   ;;  %v1012_v30 = vadd.f32 %v2295_v51, %v867_v27  ;;  %v830_v34 = vadd.f32 %v829_v29, %v740_v28 }
 0x136   : > { %v1044_v32 = vmax.f32 %v1012_v30, 0.0  ;;  %v997_v39 = vadd.f32 %v2295_v51, %v830_v34 }
 0x138   : > { %v1604_v33 = vpack.c.bf16 %v1044_v32, %v1043_v31  ;;  %v780_v35 = vpop.f32.mrf.mxu2  ;;  %v1029_v43 = vmax.f32 %v997_v39, 0.0 }
 0x139   : > { %v869_v36 = vpop.f32.mrf.mxu3 }
 0x13a   : > { %1632 = vst [vmem:[%s2301_s6 + $0x60] sm:$0xff] %v1604_v33   ;;  %v742_v37 = vpop.f32.mrf.mxu0  ;;  %v870_v41 = vadd.f32 %v869_v36, %v780_v35 }
 0x13b   : > { %v831_v38 = vpop.f32.mrf.mxu1 }
 0x13c   : > { %v832_v40 = vadd.f32 %v831_v38, %v742_v37  ;;  %v1013_v47 = vadd.f32 %v2295_v51, %v870_v41 }
 0x13e   : > { %v998_v42 = vadd.f32 %v2295_v51, %v832_v40  ;;  %v1045_v54 = vmax.f32 %v1013_v47, 0.0 }
 0x140   : > { %v1030_v44 = vmax.f32 %v998_v42, 0.0  ;;  %v782_v45 = vpop.f32.mrf.mxu2 }
 0x141   : > { %v871_v46 = vpop.f32.mrf.mxu3 }
 0x142   : > { %v1569_v48 = vpack.c.bf16 %v1030_v44, %v1029_v43  ;;  %v872_v49 = vadd.f32 %v871_v46, %v782_v45  ;;  %v745_v50 = vpop.f32.mrf.mxu0 }
 0x143   : > { %v834_v52 = vpop.f32.mrf.mxu1 }
 0x144   : > { %1625 = vst [vmem:[%s2301_s6 + $0x28] sm:$0xff] %v1569_v48   ;;  %v1014_v53 = vadd.f32 %v2295_v51, %v872_v49  ;;  %v835_v57 = vadd.f32 %v834_v52, %v745_v50 }
 0x146   : > { %v1046_v55 = vmax.f32 %v1014_v53, 0.0  ;;  %v999_v62 = vadd.f32 %v2295_v51, %v835_v57 }
 0x148   : > { %v1609_v56 = vpack.c.bf16 %v1046_v55, %v1045_v54  ;;  %v785_v58 = vpop.f32.mrf.mxu2  ;;  %v1031_v2 = vmax.f32 %v999_v62, 0.0 }
 0x149   : > { %v874_v59 = vpop.f32.mrf.mxu3 }
 0x14a   : > { %1633 = vst [vmem:[%s2301_s6 + $0x68] sm:$0xff] %v1609_v56   ;;  %v747_v60 = vpop.f32.mrf.mxu0  ;;  %v875_v0 = vadd.f32 %v874_v59, %v785_v58 }
 0x14b   : > { %v836_v61 = vpop.f32.mrf.mxu1 }
 0x14c   : > { %v837_v63 = vadd.f32 %v836_v61, %v747_v60  ;;  %v1015_v6 = vadd.f32 %v2295_v51, %v875_v0 }
 0x14e   : > { %v1000_v1 = vadd.f32 %v2295_v51, %v837_v63  ;;  %v1047_v12 = vmax.f32 %v1015_v6, 0.0 }
 0x150   : > { %v1032_v3 = vmax.f32 %v1000_v1, 0.0  ;;  %v787_v4 = vpop.f32.mrf.mxu2 }
 0x151   : > { %v876_v5 = vpop.f32.mrf.mxu3 }
 0x152   : > { %v1574_v7 = vpack.c.bf16 %v1032_v3, %v1031_v2  ;;  %v877_v8 = vadd.f32 %v876_v5, %v787_v4  ;;  %v750_v9 = vpop.f32.mrf.mxu0 }
 0x153   : > { %v839_v10 = vpop.f32.mrf.mxu1 }
 0x154   : > { %1626 = vst [vmem:[%s2301_s6 + $0x30] sm:$0xff] %v1574_v7   ;;  %v1016_v11 = vadd.f32 %v2295_v51, %v877_v8  ;;  %v840_v15 = vadd.f32 %v839_v10, %v750_v9 }
 0x156   : > { %v1048_v13 = vmax.f32 %v1016_v11, 0.0  ;;  %v1001_v20 = vadd.f32 %v2295_v51, %v840_v15 }
 0x158   : > { %v1614_v14 = vpack.c.bf16 %v1048_v13, %v1047_v12  ;;  %v790_v16 = vpop.f32.mrf.mxu2  ;;  %v1033_v24 = vmax.f32 %v1001_v20, 0.0 }
 0x159   : > { %v879_v17 = vpop.f32.mrf.mxu3 }
 0x15a   : > { %1634 = vst [vmem:[%s2301_s6 + $0x70] sm:$0xff] %v1614_v14   ;;  %v752_v18 = vpop.f32.mrf.mxu0  ;;  %v880_v22 = vadd.f32 %v879_v17, %v790_v16 }
 0x15b   : > { %v841_v19 = vpop.f32.mrf.mxu1 }
 0x15c   : > { %v842_v21 = vadd.f32 %v841_v19, %v752_v18  ;;  %v1017_v28 = vadd.f32 %v2295_v51, %v880_v22 }
 0x15e   : > { %v1002_v23 = vadd.f32 %v2295_v51, %v842_v21  ;;  %v1049_v32 = vmax.f32 %v1017_v28, 0.0 }
 0x160   : > { %v1034_v25 = vmax.f32 %v1002_v23, 0.0  ;;  %v792_v26 = vpop.f32.mrf.mxu2 }
 0x161   : > { %v881_v27 = vpop.f32.mrf.mxu3 }
 0x162   : > { %v1579_v29 = vpack.c.bf16 %v1034_v25, %v1033_v24  ;;  %v882_v30 = vadd.f32 %v881_v27, %v792_v26 }
 0x164   : > { %1627 = vst [vmem:[%s2301_s6 + $0x38] sm:$0xff] %v1579_v29   ;;  %v1018_v31 = vadd.f32 %v2295_v51, %v882_v30 }
 0x166   : > { %v1050_v33 = vmax.f32 %v1018_v31, 0.0 }
 0x168   : > { %v1619_v34 = vpack.c.bf16 %v1050_v33, %v1049_v32 }
 0x16a   : > { %1635 = vst [vmem:[%s2301_s6 + $0x78] sm:$0xff] %v1619_v34  }
 0x16b   : > { %1888 = shalt.err (!%p1885_p8)
}
 0x16c   : > { %s1993_s27 = smov 64   ;;  %s1994_s6 = smov 4  }
 0x16d   : > { %1658 = dma.vmem_to_hbm [thread:$0]  (%p2147_p9), %s1132_s30, 2048, %s1134_s17, %s1116_s11, %s1993_s27, %s1993_s27, %s1994_s6  }
 0x16e PF: > { %s2452_s28 = sld [smem:[#allocation13_spill]]  ;;  %p1675_p11 = scmp.ge.s32.totalorder %s1987_s22, 2 }
 0x170   : > { %p1671_p0 = pnand %p1675_p11, %p2153_p5 }
 0x172   : > { %p1672_p1 = pneg %p1671_p0 }
 0x174   : > { %s1148_s7 = sand.u32 1, %s2452_s28  }
 0x175   : > { %s1149_s9 = scalar_lea.sflag [#allocation5], %s1148_s7 }
 0x176   : > { %1942 = dma.done.wait (%p1672_p1), %s1149_s9, 2048  }
 0x177   : > { %1944 = vsyncadd (%p1672_p1), %s1149_s9, 4294965248  ;;  %s22_s22 = sadd.s32 1, %s1987_s22   ;;  %s2454_s3 = sld [smem:[#allocation14_spill]] }
 0x178   : > { %p19_p12 = scmp.ge.s32.totalorder %s22_s22, 6   ;;  %s2455_s17 = sld [smem:[#allocation23_spill]] }
 0x179   : > { %s2456_s18 = sld [smem:[#allocation17_spill]]  ;;  %s2459_s12 = smov %s1951_s13 }
 0x17a   : > { %s2457_s20 = sld [smem:[#allocation19_spill]]  ;;  %s2460_s13 = smov %s1955_s14 }
 0x17b   : > { %s2458_s1 = sld [smem:[#allocation21_spill]]  ;;  %s2461_s14 = smov %s2163_s15 }
 0x17c   : > { %s2462_s15 = smov %s1963_s16  ;;  %s2464_s19 = smov %s1983_s21 }
 0x17d   : > { %s2463_s16 = smov %s2454_s3  ;;  %21 = sbr.rel (!%p19_p12) target bundleno = 14 (0xe), region = 109 }
 0x181   : > { %s2465_s21 = smov %s2458_s1 }
 0x182   :  { %1155 = vsyncpa [#allocation4], 1 }
 0x183   :  { %1157 = vsyncpa [#allocation4 + $0x1], 1 }
 0x184   :  { %1158 = vsyncpa [#allocation7], 1 }
 0x185   :  { %1160 = vsyncpa [#allocation7 + $0x1], 1 }
 0x186   :  { %1161 = vsyncpa [#allocation5], 1 }
 0x187   :  { %1163 = vsyncpa [#allocation5 + $0x1], 1 }

</bundles_post_ra>
